<compile_context>
chip_gen: v5e
topology: v5e:2x2
jax: 0.10.0
libtpu: 0.0.40
codegen_flags: <defaults>
</compile_context>

<pallas_src>
import functools

import jax
import jax.numpy as jnp
from jax.experimental import pallas as pl
from jax.experimental.pallas import tpu as pltpu


def _round_up(x, m):
    return (x + m - 1) // m * m


def _activation_split(out_dim, act_weight=(7.0, 7.0, 2.0)):
    """Number of convex / concave / saturated units, act_weight proportions."""
    total = float(sum(act_weight))
    s_convex = int(round(out_dim * act_weight[0] / total))
    s_concave = int(round(out_dim * act_weight[1] / total))
    s_saturated = out_dim - s_convex - s_concave
    assert s_saturated >= 0
    return s_convex, s_concave, s_saturated


def init_params(key, gamma_min=-13.3, gamma_max=5.0, hid_dim=3,
                act_weight=(7.0, 7.0, 2.0)):
    """Deterministic init mirroring nn.Linear's U(-1/sqrt(in), 1/sqrt(in))."""
    if isinstance(hid_dim, int):
        hid_dim = [hid_dim]
    dims = [1, *hid_dim, 1]
    layers = []
    layer_cfgs = []
    for layer, (inp, out) in enumerate(zip(dims[:-1], dims[1:])):
        key, kw, kb = jax.random.split(key, 3)
        bound = 1.0 / float(inp) ** 0.5
        w = jax.random.uniform(kw, (out, inp), jnp.float32, -bound, bound)
        b = jax.random.uniform(kb, (1, out), jnp.float32, -bound, bound)
        indicator = 1.0 if layer > 0 else -1.0  # first layer decreasing, rest increasing
        s_cvx, s_ccv, _ = _activation_split(out, act_weight)
        layers.append((jnp.asarray(w.T), b))     # stored pre-transposed (in, out)
        layer_cfgs.append((inp, out, indicator, s_cvx, s_ccv))
    params = {
        "layers": layers,
        "gamma_min": jnp.asarray(gamma_min, jnp.float32),
        "gamma_max": jnp.asarray(gamma_max, jnp.float32),
    }
    return params, tuple(layer_cfgs)


def _effective_layers(params, layer_cfgs):
    """Monotonicity constraint |W| * indicator, computed once per forward."""
    eff = []
    for (wT, b), (in_dim, out_dim, indicator, s_cvx, s_ccv) in zip(
            params["layers"], layer_cfgs):
        eff.append((jnp.abs(wT) * indicator, b, in_dim, out_dim, s_cvx, s_ccv))
    return eff


def _mlp_jax(x, eff_layers):
    """Pure-JAX monotone MLP on (N, 1) inputs.  No matmul -> exact f32 math."""
    h = x
    for eff_wT, b, in_dim, out_dim, s_cvx, s_ccv in eff_layers:
        pre = (h[:, :, None] * eff_wT[None, :, :]).sum(axis=1) + b   # (N, out)
        cols = []
        for j in range(out_dim):
            c = pre[:, j:j + 1]
            if j < s_cvx:
                c = jnp.maximum(c, 0.0)           # convex: relu
            elif j < s_cvx + s_ccv:
                c = jnp.minimum(c, 0.0)           # concave: -relu(-x)
            else:
                c = jnp.clip(c, -1.0, 1.0)        # saturated
            cols.append(c)
        h = jnp.concatenate(cols, axis=1)
    return h


def _schedule_kernel(layer_cfgs, p_ref, t_ref, out_ref):
    """Lane-dense monotone-MLP forward.

    p_ref : SMEM (P,) f32, packed [w0, b0, w1, b1, ..., lo, hi].  Each w is
            stored (in, out) row-major and is already |W| * indicator; the last
            layer's w/b additionally have the renormalization scale/offset
            folded in, and its activation is the clamp to [lo, hi].
    t_ref / out_ref : VMEM (8, BC) f32 tiles; the batch rides the sublane x
            lane grid so every op runs at full vreg width and the final store
            is an unmasked, lane-dense `vst` (except on partial tail blocks,
            where Pallas masks the out-of-bounds writes for us).
    """
    h = [t_ref[...]]                               # per-unit (8, BC) planes
    off = 0
    n_layers = len(layer_cfgs)
    for li, (in_dim, out_dim, s_cvx, s_ccv) in enumerate(layer_cfgs):
        last_layer = li == n_layers - 1
        w = [[p_ref[off + k * out_dim + j] for j in range(out_dim)]
             for k in range(in_dim)]
        off += in_dim * out_dim
        b = [p_ref[off + j] for j in range(out_dim)]
        off += out_dim
        new_h = []
        for j in range(out_dim):
            # Tiny contraction: broadcast-scalar FMAs on the VPU (MXU would be
            # wasted on in_dim <= 3).
            a = h[0] * w[0][j] + b[j]
            for k in range(1, in_dim):
                a = a + h[k] * w[k][j]
            # Activation group is static per unit -> no iota / masks needed.
            if last_layer:
                # scale/offset folded into w,b; activation folded into [lo,hi].
                lo = p_ref[off]
                hi = p_ref[off + 1]
                a = jnp.minimum(jnp.maximum(a, lo), hi)
            elif j < s_cvx:
                a = jnp.maximum(a, 0.0)
            elif j < s_cvx + s_ccv:
                a = jnp.minimum(a, 0.0)
            else:
                a = jnp.clip(a, -1.0, 1.0)
            new_h.append(a)
        h = new_h
    out_ref[...] = h[0]


def learnable_schedule_forward(t, params, layer_cfgs, *, target_block_cols=65536):
    """t: (B, 1) float32 -> gamma(t): (B, 1) float32.

    target_block_cols=65536 -> ~2 MiB f32 blocks: safe on v5e's 16 MiB scoped
    VMEM default (4 double-buffered tiles = 8 MiB) and large enough to amortize
    per-grid-step overhead on v6e/v7x.  Going to 4 MiB (131072) is fine on
    v6e/v7x but needs vmem_limit_bytes raised on v5e.
    """
    B = t.shape[0]
    eff_layers = _effective_layers(params, layer_cfgs)

    # gamma(0) / gamma(1) are batch-constant: evaluate once on a 2-element
    # input and fold the renormalization into scale/offset scalars.
    ends = _mlp_jax(jnp.array([[0.0], [1.0]], jnp.float32), eff_layers)
    g0, g1 = ends[0, 0], ends[1, 0]
    gmin, gmax = params["gamma_min"], params["gamma_max"]
    denom = g1 - g0
    # Sign-preserving guard: degenerate init with g1 ~= g0 must not emit inf/NaN.
    eps = jnp.float32(1e-12)
    denom = jnp.where(jnp.abs(denom) < eps,
                      jnp.where(denom >= 0, eps, -eps), denom)
    scale = (gmax - gmin) / denom
    offset = gmin - scale * g0

    # Fold scale/offset into the LAST layer (out_dim == 1 by construction).
    # Its activation is a clamp to [rlo, rhi] for every activation group, and
    #   scale * clamp(z, rlo, rhi) + offset
    #     == clamp(scale*z + offset, min(c0,c1), max(c0,c1)),
    #   c{0,1} = scale*r{lo,hi} + offset
    # so the kernel only needs folded weights + two clamp bounds (saves the
    # final per-element FMA).
    parts = []
    n_layers = len(eff_layers)
    lo = hi = None
    for li, (eff_wT, b, in_dim, out_dim, s_cvx, s_ccv) in enumerate(eff_layers):
        if li == n_layers - 1:
            eff_wT = eff_wT * scale
            b = b * scale + offset
            if s_cvx > 0:                       # convex: relu -> range [0, inf)
                rlo, rhi = 0.0, jnp.inf
            elif s_cvx + s_ccv > 0:             # concave -> range (-inf, 0]
                rlo, rhi = -jnp.inf, 0.0
            else:                               # saturated -> range [-1, 1]
                rlo, rhi = -1.0, 1.0
            c0 = scale * rlo + offset
            c1 = scale * rhi + offset
            lo = jnp.minimum(c0, c1)
            hi = jnp.maximum(c0, c1)
        parts.append(eff_wT.reshape(-1))
        parts.append(jnp.reshape(b, (-1,)))
    parts.append(jnp.stack([lo, hi]))
    packed = jnp.concatenate(parts).astype(jnp.float32)   # one tiny SMEM DMA

    # Lane-dense layout with no wrapper-side HBM pass in the common case:
    # (B,) -> (8, B//8) is a free row-major reshape when B % 8 == 0.  The
    # ragged column tail is handled by Pallas' partial-final-block semantics
    # (OOB writes dropped), so no padding to a block multiple is needed.
    rows = 8
    t_flat = jnp.reshape(t.astype(jnp.float32), (-1,))
    pad = (-B) % rows
    if pad:
        # Only when B % 8 != 0: costs one extra pass over t (and a slice on the
        # way out).  Batch sizes that are multiples of 8 stay zero-copy.
        t_flat = jnp.pad(t_flat, (0, pad))
    Bp = B + pad
    cols = Bp // rows
    t2d = t_flat.reshape(rows, cols)

    # Block selection: >= 2 blocks whenever possible (both v7x TensorCores get
    # work), ~target_block_cols lanes per block for large batches, block width
    # a multiple of 128 so stores stay unmasked / lane-dense.
    if cols <= 128:
        bc, n_blocks = cols, 1
    else:
        want_blocks = max(2, pl.cdiv(cols, target_block_cols))
        want_blocks = min(want_blocks, pl.cdiv(cols, 128))
        bc = _round_up(pl.cdiv(cols, want_blocks), 128)
        n_blocks = pl.cdiv(cols, bc)

    kcfgs = tuple((i, o, sc, scc) for (i, o, _ind, sc, scc) in layer_cfgs)
    kernel = functools.partial(_schedule_kernel, kcfgs)

    out2d = pl.pallas_call(
        kernel,
        out_shape=jax.ShapeDtypeStruct((rows, cols), jnp.float32),
        grid=(n_blocks,),
        in_specs=[
            pl.BlockSpec(memory_space=pltpu.MemorySpace.SMEM),   # packed params
            pl.BlockSpec((rows, bc), lambda i: (0, i)),          # t tile
        ],
        out_specs=pl.BlockSpec((rows, bc), lambda i: (0, i)),
        compiler_params=pltpu.CompilerParams(
            dimension_semantics=("parallel",)),
    )(packed, t2d)

    out = out2d.reshape(Bp)
    if pad:
        out = out[:B]
    return out.reshape(B, 1)


def reference_forward(t, params, layer_cfgs):
    """Pure-JAX reference following the PyTorch module structure (exact f32)."""
    eff_layers = _effective_layers(params, layer_cfgs)
    g_t = _mlp_jax(t, eff_layers)
    g_0 = _mlp_jax(jnp.zeros_like(t), eff_layers)
    g_1 = _mlp_jax(jnp.ones_like(t), eff_layers)
    gmin, gmax = params["gamma_min"], params["gamma_max"]
    return gmin + (gmax - gmin) * (g_t - g_0) / (g_1 - g_0)


if __name__ == "__main__":
    key = jax.random.PRNGKey(0)
    kp, kt = jax.random.split(key)

    params, layer_cfgs = init_params(kp)              # dims [1, 3, 1]

    # Exercise: tiny batch, non-multiple-of-8 (pad path), multiple-of-8 with a
    # non-128-multiple lane dim (partial/full-extent block), and a 2-block grid.
    for B in (8, 13, 1000, 4096):
        kt, kb = jax.random.split(kt)
        t = jax.random.uniform(kb, (B, 1), jnp.float32)   # timesteps in [0, 1)

        out = jax.block_until_ready(
            learnable_schedule_forward(t, params, layer_cfgs))
        ref = reference_forward(t, params, layer_cfgs)

        assert out.shape == (B, 1)
        assert bool(jnp.all(jnp.isfinite(out)))
        # |gamma(1)-gamma(0)| can be small with random init, so the
        # renormalization amplifies f32 rounding-order differences; 1e-3 is an
        # appropriate tolerance for this exactness-preserving refactor.
        assert bool(jnp.allclose(out, ref, atol=1e-3, rtol=1e-3)), (B, out, ref)

    print("KERNEL_OK")
</pallas_src>

<mosaic_0001>
module attributes {stable_mosaic.version = 11 : i64} {
  func.func @_schedule_kernel(%arg0: i32, %arg1: memref<12xf32, #tpu.memory_space<smem>>, %arg2: memref<8x1xf32, #tpu.memory_space<vmem>>, %arg3: memref<8x1xf32, #tpu.memory_space<vmem>>) attributes {dimension_semantics = [#tpu.dimension_semantics<parallel>], iteration_bounds = array<i64: 1>, scalar_prefetch = 0 : i64, scratch_operands = 0 : i64, tpu.core_type = #tpu.core_type<tc>, window_params = [{transform_indices = @transform_0, window_bounds = array<i64: 12>}, {transform_indices = @transform_1, window_bounds = array<i64: 8, 1>}, {transform_indices = @transform_2, window_bounds = array<i64: 8, 1>}]} {
    %c0 = arith.constant 0 : index
    %c0_0 = arith.constant 0 : index
    %0 = vector.load %arg2[%c0, %c0_0] : memref<8x1xf32, #tpu.memory_space<vmem>>, vector<8x1xf32>
    %c0_1 = arith.constant 0 : index
    %1 = memref.load %arg1[%c0_1] : memref<12xf32, #tpu.memory_space<smem>>
    %c1 = arith.constant 1 : index
    %2 = memref.load %arg1[%c1] : memref<12xf32, #tpu.memory_space<smem>>
    %c2 = arith.constant 2 : index
    %3 = memref.load %arg1[%c2] : memref<12xf32, #tpu.memory_space<smem>>
    %c3 = arith.constant 3 : index
    %4 = memref.load %arg1[%c3] : memref<12xf32, #tpu.memory_space<smem>>
    %c4 = arith.constant 4 : index
    %5 = memref.load %arg1[%c4] : memref<12xf32, #tpu.memory_space<smem>>
    %c5 = arith.constant 5 : index
    %6 = memref.load %arg1[%c5] : memref<12xf32, #tpu.memory_space<smem>>
    %7 = vector.broadcast %1 : f32 to vector<8x1xf32>
    %8 = arith.mulf %0, %7 : vector<8x1xf32>
    %9 = vector.broadcast %4 : f32 to vector<8x1xf32>
    %10 = arith.addf %8, %9 : vector<8x1xf32>
    %cst = arith.constant 0.000000e+00 : f32
    %11 = vector.broadcast %cst : f32 to vector<8x1xf32>
    %12 = arith.maximumf %10, %11 : vector<8x1xf32>
    %13 = vector.broadcast %2 : f32 to vector<8x1xf32>
    %14 = arith.mulf %0, %13 : vector<8x1xf32>
    %15 = vector.broadcast %5 : f32 to vector<8x1xf32>
    %16 = arith.addf %14, %15 : vector<8x1xf32>
    %cst_2 = arith.constant 0.000000e+00 : f32
    %17 = vector.broadcast %cst_2 : f32 to vector<8x1xf32>
    %18 = arith.minimumf %16, %17 : vector<8x1xf32>
    %19 = vector.broadcast %3 : f32 to vector<8x1xf32>
    %20 = arith.mulf %0, %19 : vector<8x1xf32>
    %21 = vector.broadcast %6 : f32 to vector<8x1xf32>
    %22 = arith.addf %20, %21 : vector<8x1xf32>
    %cst_3 = arith.constant -1.000000e+00 : f32
    %cst_4 = arith.constant 1.000000e+00 : f32
    %23 = vector.broadcast %cst_3 : f32 to vector<8x1xf32>
    %24 = arith.maximumf %23, %22 : vector<8x1xf32>
    %25 = vector.broadcast %cst_4 : f32 to vector<8x1xf32>
    %26 = arith.minimumf %25, %24 : vector<8x1xf32>
    %c6 = arith.constant 6 : index
    %27 = memref.load %arg1[%c6] : memref<12xf32, #tpu.memory_space<smem>>
    %c7 = arith.constant 7 : index
    %28 = memref.load %arg1[%c7] : memref<12xf32, #tpu.memory_space<smem>>
    %c8 = arith.constant 8 : index
    %29 = memref.load %arg1[%c8] : memref<12xf32, #tpu.memory_space<smem>>
    %c9 = arith.constant 9 : index
    %30 = memref.load %arg1[%c9] : memref<12xf32, #tpu.memory_space<smem>>
    %31 = vector.broadcast %27 : f32 to vector<8x1xf32>
    %32 = arith.mulf %12, %31 : vector<8x1xf32>
    %33 = vector.broadcast %30 : f32 to vector<8x1xf32>
    %34 = arith.addf %32, %33 : vector<8x1xf32>
    %35 = vector.broadcast %28 : f32 to vector<8x1xf32>
    %36 = arith.mulf %18, %35 : vector<8x1xf32>
    %37 = arith.addf %34, %36 : vector<8x1xf32>
    %38 = vector.broadcast %29 : f32 to vector<8x1xf32>
    %39 = arith.mulf %26, %38 : vector<8x1xf32>
    %40 = arith.addf %37, %39 : vector<8x1xf32>
    %c10 = arith.constant 10 : index
    %41 = memref.load %arg1[%c10] : memref<12xf32, #tpu.memory_space<smem>>
    %c11 = arith.constant 11 : index
    %42 = memref.load %arg1[%c11] : memref<12xf32, #tpu.memory_space<smem>>
    %43 = vector.broadcast %41 : f32 to vector<8x1xf32>
    %44 = arith.maximumf %40, %43 : vector<8x1xf32>
    %45 = vector.broadcast %42 : f32 to vector<8x1xf32>
    %46 = arith.minimumf %44, %45 : vector<8x1xf32>
    %c0_5 = arith.constant 0 : index
    %c0_6 = arith.constant 0 : index
    %47 = vector.load %arg3[%c0_5, %c0_6] : memref<8x1xf32, #tpu.memory_space<vmem>>, vector<8x1xf32>
    tpu.vector_store %arg3[%c0_5, %c0_6], %46 {strides = array<i32>} : memref<8x1xf32, #tpu.memory_space<vmem>>, vector<8x1xf32>,
    return
  }
  func.func @transform_0(%arg0: i32) -> i32 {
    %c0_i32 = arith.constant 0 : i32
    %c0_i32_0 = arith.constant 0 : i32
    return %c0_i32 : i32
  }
  func.func @transform_1(%arg0: i32) -> (i32, i32) {
    %c0_i32 = arith.constant 0 : i32
    %c0_i32_0 = arith.constant 0 : i32
    return %c0_i32, %arg0 : i32, i32
  }
  func.func @transform_2(%arg0: i32) -> (i32, i32) {
    %c0_i32 = arith.constant 0 : i32
    %c0_i32_0 = arith.constant 0 : i32
    return %c0_i32, %arg0 : i32, i32
  }
}

</mosaic_0001>

<bundles_post_ra>
// kernel: tpu_custom_call.1
= control target key start
LH: loop header
LB: loop body
LE: loop exit
PB: predicated region body
PF: predicated region fallthrough
CT: control target
= control target key end

     0   :  { %7 = vsyncpa [#allocation3], 0  ;;  %s101_s12 = smov [#allocation2]   ;;  %s126_s0 = inlined_call_operand.vmem [shape: f32[12], index: 0, kind: input, shape index: {}]   ;;  %s127_s1 = inlined_call_operand.vmem [shape: f32[8,1], index: 1, kind: input, shape index: {}]   ;;  %s128_s2 = inlined_call_operand.vmem [shape: f32[8,1], index: 2, kind: output, shape index: {}]  }
   0x1   :  { %s13_s11 = sshll.u32 %s126_s0, 4  ;;  %s14_s11 = int_to_ptr.vmem [resolvable:$true] %s13_s11 }
   0x2   :  { %16 = dma.vmem_to_smem %s14_s11, 16, %s101_s12, [#allocation3]  }
   0x3   :  { %99 = dma.done.wait [#allocation3], 16  }
   0x4   :  { %100 = vsyncadd [#allocation3], 4294967280 }
   0x5   :  { %23 = sfence }
   0x6   :  { %s25_s13 = sld [smem:[#allocation2]]  ;;  %v24_v0 = vld [vmem:[%s127_s1] sm:$0xff]  ;;  %vm67_vm0 = vcmask 7168  }
   0x7   :  { %s74_s14 = sld [smem:[#allocation2 + $0x1]] }
   0x8   :  { %s75_s15 = sld [smem:[#allocation2 + $0x2]] }
   0x9   :  { %s76_s16 = sld [smem:[#allocation2 + $0x3]] }
   0xa   :  { %s77_s19 = sld [smem:[#allocation2 + $0x4]] }
   0xb   :  { %s78_s20 = sld [smem:[#allocation2 + $0x5]] }
   0xc   :  { %v31_v1 = vstv %s25_s13  ;;  %s80_s21 = sld [smem:[#allocation2 + $0x6]] }
   0xd   :  { %v32_v2 = vmul.f32 %v31_v1, %v24_v0  ;;  %v36_v3 = vstv %s74_s14  ;;  %s81_s0 = sld [smem:[#allocation2 + $0x7]] }
   0xe   :  { %v37_v4 = vmul.f32 %v36_v3, %v24_v0  ;;  %v41_v5 = vstv %s75_s15  ;;  %s82_s22 = sld [smem:[#allocation2 + $0x8]] }
   0xf   :  { %v33_v6 = vstv %s76_s16  ;;  %v42_v7 = vmul.f32 %v41_v5, %v24_v0  ;;  %s83_s23 = sld [smem:[#allocation2 + $0x9]] }
  0x10   :  { %v34_v8 = vadd.f32 %v33_v6, %v32_v2  ;;  %v38_v9 = vstv %s77_s19  ;;  %s84_s24 = sld [smem:[#allocation2 + $0xa]] }
  0x11   :  { %v39_v10 = vadd.f32 %v38_v9, %v37_v4  ;;  %v43_v11 = vstv %s78_s20  ;;  %s85_s1 = sld [smem:[#allocation2 + $0xb]] }
  0x12   :  { %v35_v12 = vmax.f32 %v34_v8, 0.0  ;;  %v44_v13 = vadd.f32 %v43_v11, %v42_v7  ;;  %v51_v14 = vstv %s80_s21 }
  0x13   :  { %v40_v15 = vmin.f32 %v39_v10, 0.0  ;;  %v55_v16 = vstv %s81_s0 }
  0x14   :  { %v79_v17 = vclamps-f32 %v44_v13, 1.0  ;;  %v52_v18 = vmul.f32 %v51_v14, %v35_v12  ;;  %v58_v19 = vstv %s82_s22 }
  0x15   :  { %v53_v20 = vstv %s83_s23  ;;  %v56_v21 = vmul.f32 %v55_v16, %v40_v15 }
  0x16   :  { %v54_v22 = vadd.f32 %v53_v20, %v52_v18  ;;  %v59_v23 = vmul.f32 %v79_v17, %v58_v19  ;;  %v63_v25 = vstv %s84_s24 }
  0x17   :  { %v65_v27 = vstv %s85_s1 }
  0x18   :  { %v57_v24 = vadd.f32 %v56_v21, %v54_v22 }
  0x1a   :  { %v60_v26 = vadd.f32 %v59_v23, %v57_v24 }
  0x1c   :  { %v64_v28 = vmax.f32 %v60_v26, %v63_v25 }
  0x1e   :  { %v66_v29 = vmin.f32 %v64_v28, %v65_v27 }
  0x20   :  { %68 = vst.msk [vmem:[%s128_s2] sm:$0xff] %vm67_vm0, %v66_v29 }
  0x21   :  { %73 = vsyncpa [#allocation3], 1 }

</bundles_post_ra>
